<compile_context>
chip_gen: v5e
topology: v5e:2x2
jax: 0.10.0
libtpu: 0.0.40
codegen_flags: <defaults>
</compile_context>

<pallas_src>
import functools

import jax
import jax.numpy as jnp
from jax.experimental import pallas as pl
from jax.experimental.pallas import tpu as pltpu


def _round_up(n, m):
    return ((n + m - 1) // m) * m


@functools.lru_cache(maxsize=None)
def _vmem_capacity_bytes():
    try:
        cap = int(pltpu.get_tpu_info().vmem_capacity_bytes)
        if cap > 0:
            return cap
    except Exception:
        pass
    return 64 << 20  # v7x per-core VMEM: smallest across generations, safe fallback.


def _footprint_bytes(tb, th, dp, x_bytes, n_w):
    """Approximate VMEM working set for one grid step."""
    return (2 * tb * dp * x_bytes      # x tile (double-buffered)
            + n_w * th * dp * 2        # W1 row block(s), bf16
            + n_w * th * 512           # (th, 2) bias/w2 columns, lane-padded f32
            + 2 * 8 * tb * 4           # output slab buffers
            + th * tb * 4              # f32 hT temporary
            + tb * dp * 2)             # in-kernel bf16 cast of the x tile


def _choose_config(B, dp, vmem_budget):
    """Pick (tb, th): batch tile and hidden (W1-row) tile."""
    # Batch tile: >= 2 grid steps when B > 128 so v7x megacore sharding kicks
    # in; cap at 512 (beyond that the ~0.35us/step overhead is negligible and
    # the f32 x tile / hT temp stay bounded on every generation).
    if B <= 128:
        tb0 = 128
    else:
        bp_min = _round_up(B, 128)
        tb0 = min(512, _round_up((bp_min + 1) // 2, 128))

    def fits(tb, th, n_w):
        return _footprint_bytes(tb, th, dp, 4, n_w) <= vmem_budget

    # Prefer a fully VMEM-resident W1 (fetched once, single-buffered).
    tb = tb0
    while tb > 128 and not fits(tb, dp, 1):
        tb -= 128
    if fits(tb, dp, 1):
        return tb, dp

    # Fall back to streaming W1 in (th, Dp) row blocks over the reduction axis.
    th = 512 if dp % 512 == 0 else (256 if dp % 256 == 0 else 128)
    tb = tb0
    while tb > 128 and not fits(tb, th, 2):
        tb -= 128
    # TODO(synk): for extreme Dp (>~25K) even (128, 128) tiles overflow a v7x
    # VMEM budget; a K-tiled (input-feature) contraction would be the next step.
    return tb, th


def mlp_kernel(x_ref, w1t_ref, bw_ref, b2_ref, o_ref):
    # x_ref:   (tb, Dp)    f32 or bf16 -- batch on sublanes, features on lanes
    # w1t_ref: (th, Dp)    bf16        -- rows of W1 (PyTorch (out, in) layout)
    # bw_ref:  (th, 2)     f32         -- col 0 = b1 slice, col 1 = w2 slice
    # b2_ref:  (1,)        f32         -- scalar in SMEM
    # o_ref:   (1, 1, tb)  f32         -- lane-dense output slab (batch on lanes)
    k = pl.program_id(1)

    @pl.when(k == 0)
    def _init():
        o_ref[...] = jnp.zeros_like(o_ref)

    x_bf = x_ref[...].astype(jnp.bfloat16)  # no-op when x already arrives as bf16
    # hT[h, b] = sum_d W1[h, d] * x[b, d]  ("NT" contraction) -> (th, tb) on the MXU.
    h_t = jax.lax.dot_general(
        w1t_ref[...], x_bf,
        dimension_numbers=(((1,), (1,)), ((), ())),
        preferred_element_type=jnp.float32,
    )
    h_t = jnp.maximum(h_t + bw_ref[:, 0:1], 0.0)                   # bias + ReLU (VPU)
    partial = jnp.sum(h_t * bw_ref[:, 1:2], axis=0, keepdims=True)  # (1, tb) reduce

    o_ref[...] += partial[None]

    @pl.when(k == pl.num_programs(1) - 1)
    def _finalize():
        o_ref[...] += b2_ref[0]


def prepare_params(w1t, b1, w2, b2):
    """One-time weight padding / casting (hoisted out of the per-call path).

    w1t: (D, D) first Linear weight, PyTorch (out_features, in_features) layout.
    b1:  (D,)   first Linear bias.
    w2:  (D,)   second Linear weight (out_features=1), squeezed.
    b2:  ()     second Linear bias.
    """
    D = w1t.shape[0]
    dp = _round_up(D, 128)
    w1p = jnp.zeros((dp, dp), jnp.bfloat16).at[:D, :D].set(w1t.astype(jnp.bfloat16))
    bw = (jnp.zeros((dp, 2), jnp.float32)
          .at[:D, 0].set(b1.astype(jnp.float32))
          .at[:D, 1].set(w2.astype(jnp.float32)))
    b2v = jnp.reshape(b2.astype(jnp.float32), (1,))
    return w1p, bw, b2v


@functools.partial(jax.jit, static_argnames=("tb", "th"))
def binary_classifier_forward(x, w1p, bw, b2v, *, tb=None, th=None):
    """Forward pass of BinaryClassifier.  x: (B, D) f32; weights from prepare_params."""
    B, D = x.shape
    dp = w1p.shape[0]

    budget = int(0.85 * _vmem_capacity_bytes())
    tb_auto, th_auto = _choose_config(B, dp, budget)
    tb = tb_auto if tb is None else tb
    th = th_auto if th is None else th
    assert tb % 128 == 0 and dp % th == 0, (tb, th, dp)

    bp = _round_up(B, tb)
    grid_b = bp // tb
    grid_k = dp // th
    w1_resident = grid_k == 1

    # x path: skip the extra HBM pad/cast round-trip when already aligned
    # (cast to bf16 happens inside the kernel); otherwise pad+cast in one pass.
    if D == dp and B == bp:
        xp = x
        x_bytes = x.dtype.itemsize
    else:
        xp = jnp.zeros((bp, dp), jnp.bfloat16).at[:B, :D].set(x.astype(jnp.bfloat16))
        x_bytes = 2

    n_w = 1 if w1_resident else 2
    footprint = _footprint_bytes(tb, th, dp, x_bytes, n_w)
    vmem_limit = int(min(max(footprint + (8 << 20), 32 << 20),
                         int(0.9 * _vmem_capacity_bytes())))

    def spec(shape, index_map, single_buffer):
        if single_buffer:
            # Grid-invariant block: one VMEM copy, never re-fetched.
            return pl.BlockSpec(shape, index_map, pipeline_mode=pl.Buffered(1))
        return pl.BlockSpec(shape, index_map)

    out3 = pl.pallas_call(
        mlp_kernel,
        out_shape=jax.ShapeDtypeStruct((grid_b, 1, tb), jnp.float32),
        grid_spec=pltpu.PrefetchScalarGridSpec(
            num_scalar_prefetch=0,
            grid=(grid_b, grid_k),
            in_specs=[
                spec((tb, dp), lambda i, k: (i, 0), grid_b == 1),   # x tile
                spec((th, dp), lambda i, k: (k, 0), w1_resident),   # W1 row block
                spec((th, 2), lambda i, k: (k, 0), w1_resident),    # [b1 | w2] slice
                pl.BlockSpec(memory_space=pltpu.MemorySpace.SMEM),  # b2 scalar
            ],
            out_specs=pl.BlockSpec((1, 1, tb), lambda i, k: (i, 0, 0)),
        ),
        compiler_params=pltpu.CompilerParams(
            dimension_semantics=("parallel", "arbitrary"),
            vmem_limit_bytes=vmem_limit,
        ),
    )(xp, w1p, bw, b2v)

    # (grid_b, 1, tb) -> (Bp, 1) -> (B, 1); row g*tb + j <- out3[g, 0, j].
    return out3.reshape(bp, 1)[:B]


def init_params(key, embed_dim):
    """Deterministic init matching nn.Linear shapes (PyTorch (out, in) layout)."""
    k1, k2, k3, k4 = jax.random.split(key, 4)
    bound = 1.0 / jnp.sqrt(embed_dim)
    w1t = jax.random.uniform(k1, (embed_dim, embed_dim), jnp.float32, -bound, bound)
    b1 = jax.random.uniform(k2, (embed_dim,), jnp.float32, -bound, bound)
    w2 = jax.random.uniform(k3, (embed_dim,), jnp.float32, -bound, bound)
    b2 = jax.random.uniform(k4, (), jnp.float32, -bound, bound)
    return w1t, b1, w2, b2


def reference(x, w1t, b1, w2, b2):
    # Matches kernel numerics: bf16 layer-1 inputs, f32 accumulation, f32 layer 2.
    xb = x.astype(jnp.bfloat16).astype(jnp.float32)
    w1f = w1t.astype(jnp.bfloat16).astype(jnp.float32)
    h = jnp.maximum(
        jnp.dot(xb, w1f.T, precision=jax.lax.Precision.HIGHEST) + b1[None, :], 0.0)
    return jnp.sum(h * w2[None, :], axis=1, keepdims=True) + b2


if __name__ == "__main__":
    key = jax.random.PRNGKey(0)
    kx1, kp1, kx2, kp2 = jax.random.split(key, 4)

    # --- Test 1: module-sized shapes (batch=8, embed_dim=32); padded bf16 x path. ---
    x1 = jax.random.normal(kx1, (8, 32), jnp.float32)
    p1_raw = init_params(kp1, 32)
    p1 = prepare_params(*p1_raw)
    out1 = jax.block_until_ready(binary_classifier_forward(x1, *p1))
    assert out1.shape == (8, 1)
    assert jnp.allclose(out1, reference(x1, *p1_raw), atol=2e-3, rtol=2e-3)

    # --- Test 2: aligned shapes (B=256, D=256); unpadded f32 x, two batch tiles. ---
    x2 = jax.random.normal(kx2, (256, 256), jnp.float32)
    p2_raw = init_params(kp2, 256)
    p2 = prepare_params(*p2_raw)
    out2 = jax.block_until_ready(binary_classifier_forward(x2, *p2))
    assert out2.shape == (256, 1)
    assert jnp.allclose(out2, reference(x2, *p2_raw), atol=2e-3, rtol=2e-3)

    # --- Test 3: forced hidden-dim streaming (th < Dp) to exercise the reduction axis. ---
    x3 = x2[:128]
    out3 = jax.block_until_ready(binary_classifier_forward(x3, *p2, th=128))
    assert out3.shape == (128, 1)
    assert jnp.allclose(out3, reference(x3, *p2_raw), atol=2e-3, rtol=2e-3)

    print("KERNEL_OK")
</pallas_src>

<mosaic_0001>
module attributes {stable_mosaic.version = 11 : i64} {
  func.func @mlp_kernel(%arg0: i32, %arg1: i32, %arg2: memref<128x128xbf16, #tpu.memory_space<vmem>>, %arg3: memref<128x128xbf16, #tpu.memory_space<vmem>>, %arg4: memref<128x2xf32, #tpu.memory_space<vmem>>, %arg5: memref<1xf32, #tpu.memory_space<smem>>, %arg6: memref<1x1x128xf32, #tpu.memory_space<vmem>>) attributes {dimension_semantics = [#tpu.dimension_semantics<parallel>, #tpu.dimension_semantics<arbitrary>], iteration_bounds = array<i64: 1, 1>, scalar_prefetch = 0 : i64, scratch_operands = 0 : i64, tpu.core_type = #tpu.core_type<tc>, window_params = [{pipeline_mode = #tpu.pipeline_mode<synchronous>, transform_indices = @transform_0, window_bounds = array<i64: 128, 128>}, {pipeline_mode = #tpu.pipeline_mode<synchronous>, transform_indices = @transform_1, window_bounds = array<i64: 128, 128>}, {pipeline_mode = #tpu.pipeline_mode<synchronous>, transform_indices = @transform_2, window_bounds = array<i64: 128, 2>}, {transform_indices = @transform_3, window_bounds = array<i64: 1>}, {transform_indices = @transform_4, window_bounds = array<i64: 1, 1, 128>}]} {
    %c0_i32 = arith.constant 0 : i32
    %0 = arith.cmpi eq, %arg1, %c0_i32 : i32
    %1 = arith.extui %0 : i1 to i32
    %c0_i32_0 = arith.constant 0 : i32
    %2 = arith.cmpi ne, %1, %c0_i32_0 : i32
    scf.if %2 {
      %cst_17 = arith.constant 0.000000e+00 : f32
      %23 = vector.broadcast %cst_17 : f32 to vector<1x1x128xf32>
      %c0_18 = arith.constant 0 : index
      %c0_19 = arith.constant 0 : index
      %c0_20 = arith.constant 0 : index
      %24 = vector.load %arg6[%c0_18, %c0_19, %c0_20] : memref<1x1x128xf32, #tpu.memory_space<vmem>>, vector<1x1x128xf32>
      tpu.vector_store %arg6[%c0_18, %c0_19, %c0_20], %23 {strides = array<i32>} : memref<1x1x128xf32, #tpu.memory_space<vmem>>, vector<1x1x128xf32>,
    } else {
    }
    %c0 = arith.constant 0 : index
    %c0_1 = arith.constant 0 : index
    %3 = vector.load %arg2[%c0, %c0_1] : memref<128x128xbf16, #tpu.memory_space<vmem>>, vector<128x128xbf16>
    %c0_2 = arith.constant 0 : index
    %c0_3 = arith.constant 0 : index
    %4 = vector.load %arg3[%c0_2, %c0_3] : memref<128x128xbf16, #tpu.memory_space<vmem>>, vector<128x128xbf16>
    %cst = arith.constant dense<0.000000e+00> : vector<128x128xf32>
    %5 = tpu.matmul %4, %3, %cst {dimension_numbers = #tpu.dot_dimension_numbers<[1], [1], [0], [0], [0, 0, 1, 0], [], []>} : vector<128x128xbf16>, vector<128x128xbf16>, vector<128x128xf32> -> vector<128x128xf32>
    %c0_4 = arith.constant 0 : index
    %c0_5 = arith.constant 0 : index
    %6 = vector.load %arg4[%c0_4, %c0_5] : memref<128x2xf32, #tpu.memory_space<vmem>>, vector<128x1xf32>
    %7 = vector.broadcast %6 : vector<128x1xf32> to vector<128x128xf32>
    %8 = arith.addf %5, %7 : vector<128x128xf32>
    %cst_6 = arith.constant 0.000000e+00 : f32
    %9 = vector.broadcast %cst_6 : f32 to vector<128x128xf32>
    %10 = arith.maximumf %8, %9 : vector<128x128xf32>
    %c0_7 = arith.constant 0 : index
    %c1 = arith.constant 1 : index
    %11 = vector.load %arg4[%c0_7, %c1] : memref<128x2xf32, #tpu.memory_space<vmem>>, vector<128x1xf32>
    %12 = vector.broadcast %11 : vector<128x1xf32> to vector<128x128xf32>
    %13 = arith.mulf %10, %12 : vector<128x128xf32>
    %cst_8 = arith.constant dense<0.000000e+00> : vector<128xf32>
    %14 = vector.multi_reduction <add>, %13, %cst_8 [0] : vector<128x128xf32> to vector<128xf32>
    %15 = vector.shape_cast %14 : vector<128xf32> to vector<1x128xf32>
    %c0_9 = arith.constant 0 : index
    %c0_10 = arith.constant 0 : index
    %c0_11 = arith.constant 0 : index
    %16 = vector.load %arg6[%c0_9, %c0_10, %c0_11] : memref<1x1x128xf32, #tpu.memory_space<vmem>>, vector<1x1x128xf32>
    %17 = vector.shape_cast %15 : vector<1x128xf32> to vector<1x1x128xf32>
    %18 = arith.addf %16, %17 : vector<1x1x128xf32>
    %c0_12 = arith.constant 0 : index
    %c0_13 = arith.constant 0 : index
    %c0_14 = arith.constant 0 : index
    %19 = vector.load %arg6[%c0_12, %c0_13, %c0_14] : memref<1x1x128xf32, #tpu.memory_space<vmem>>, vector<1x1x128xf32>
    tpu.vector_store %arg6[%c0_12, %c0_13, %c0_14], %18 {strides = array<i32>} : memref<1x1x128xf32, #tpu.memory_space<vmem>>, vector<1x1x128xf32>,
    %c0_i32_15 = arith.constant 0 : i32
    %20 = arith.cmpi eq, %arg1, %c0_i32_15 : i32
    %21 = arith.extui %20 : i1 to i32
    %c0_i32_16 = arith.constant 0 : i32
    %22 = arith.cmpi ne, %21, %c0_i32_16 : i32
    scf.if %22 {
      %c0_17 = arith.constant 0 : index
      %c0_18 = arith.constant 0 : index
      %c0_19 = arith.constant 0 : index
      %23 = vector.load %arg6[%c0_17, %c0_18, %c0_19] : memref<1x1x128xf32, #tpu.memory_space<vmem>>, vector<1x1x128xf32>
      %c0_20 = arith.constant 0 : index
      %24 = memref.load %arg5[%c0_20] : memref<1xf32, #tpu.memory_space<smem>>
      %25 = vector.broadcast %24 : f32 to vector<1x1x128xf32>
      %26 = arith.addf %23, %25 : vector<1x1x128xf32>
      %c0_21 = arith.constant 0 : index
      %c0_22 = arith.constant 0 : index
      %c0_23 = arith.constant 0 : index
      %27 = vector.load %arg6[%c0_21, %c0_22, %c0_23] : memref<1x1x128xf32, #tpu.memory_space<vmem>>, vector<1x1x128xf32>
      tpu.vector_store %arg6[%c0_21, %c0_22, %c0_23], %26 {strides = array<i32>} : memref<1x1x128xf32, #tpu.memory_space<vmem>>, vector<1x1x128xf32>,
    } else {
    }
    return
  }
  func.func @transform_0(%arg0: i32, %arg1: i32) -> (i32, i32) {
    %c0_i32 = arith.constant 0 : i32
    %c0_i32_0 = arith.constant 0 : i32
    return %arg0, %c0_i32 : i32, i32
  }
  func.func @transform_1(%arg0: i32, %arg1: i32) -> (i32, i32) {
    %c0_i32 = arith.constant 0 : i32
    %c0_i32_0 = arith.constant 0 : i32
    return %arg1, %c0_i32 : i32, i32
  }
  func.func @transform_2(%arg0: i32, %arg1: i32) -> (i32, i32) {
    %c0_i32 = arith.constant 0 : i32
    %c0_i32_0 = arith.constant 0 : i32
    return %arg1, %c0_i32 : i32, i32
  }
  func.func @transform_3(%arg0: i32, %arg1: i32) -> i32 {
    %c0_i32 = arith.constant 0 : i32
    %c0_i32_0 = arith.constant 0 : i32
    return %c0_i32 : i32
  }
  func.func @transform_4(%arg0: i32, %arg1: i32) -> (i32, i32, i32) {
    %c0_i32 = arith.constant 0 : i32
    %c0_i32_0 = arith.constant 0 : i32
    %c0_i32_1 = arith.constant 0 : i32
    return %arg0, %c0_i32, %c0_i32_0 : i32, i32, i32
  }
}

</mosaic_0001>

<bundles_post_ra>
// kernel: binary_classifier_forward.1
= control target key start
LH: loop header
LB: loop body
LE: loop exit
PB: predicated region body
PF: predicated region fallthrough
CT: control target
= control target key end

     0   :  { %v541_v1 = vmov 0   ;;  %v542_v22 = vmov 1   ;;  %s717_s0 = inlined_call_operand.vmem [shape: bf16[128,128], index: 0, kind: input, shape index: {}]   ;;  %s718_s2 = inlined_call_operand.vmem [shape: f32[128,2], index: 2, kind: input, shape index: {}]   ;;  %s719_s1 = inlined_call_operand.vmem [shape: bf16[128,128], index: 1, kind: input, shape index: {}]   ;;  %s720_s4 = inlined_call_operand.vmem [shape: f32[1,1,128], index: 4, kind: output, shape index: {}]   ;;  %s721_s3 = inlined_call_operand.<no memory space> [shape: f32[1], index: 3, kind: input, shape index: {}]  }
   0x1   :  { %v499_v0 = vld [vmem:[%s717_s0 + $0x38] sm:$0xff]  ;;  %536 = vset.pattern.permute.xlu1 %v541_v1  ;;  %v575_v2 = vld [vmem:[%s718_s2 + $0x10] sm:$0xff]  ;;  %535 = vset.pattern.permute.xlu0 %v541_v1  ;;  %v55_v3 = vld [vmem:[%s718_s2] sm:$0xff] }
   0x2   :  { %83 = vperm.xlu1 %536, %v575_v2   ;;  %537 = vset.pattern.permute.xlu2 %v541_v1  ;;  %v584_v4 = vld [vmem:[%s718_s2 + $0x20] sm:$0xff]  ;;  %v498_v5 = vld [vmem:[%s717_s0 + $0x30] sm:$0xff]  ;;  %v58_v6 = vld [vmem:[%s718_s2 + $0x18] sm:$0xff] }
   0x3   :  { %247 = vmatpush.bf16.xpose.msra.mxu0 %v499_v0  ;;  %508 = vmatpush.bf16.xpose.msra.mxu1 %v499_v0  ;;  %v56_v7 = vld [vmem:[%s718_s2 + $0x8] sm:$0xff]  ;;  %v62_v10 = vld [vmem:[%s718_s2 + $0x38] sm:$0xff]  ;;  %v61_v11 = vld [vmem:[%s718_s2 + $0x30] sm:$0xff] }
   0x4   :  { %509 = vmatpush.bf16.xpose.msra.mxu2 %v499_v0  ;;  %510 = vmatpush.bf16.xpose.msra.mxu3 %v499_v0  ;;  %v599_v8 = vld [vmem:[%s718_s2 + $0x28] sm:$0xff]  ;;  %v614_v12 = vld [vmem:[%s718_s2 + $0x40] sm:$0xff]  ;;  %v65_v14 = vld [vmem:[%s718_s2 + $0x50] sm:$0xff] }
   0x5   :  { %73 = vperm.xlu0 %535, %v55_v3   ;;  %93 = vperm.xlu2 %537, %v584_v4   ;;  %v497_v9 = vld [vmem:[%s717_s0 + $0x28] sm:$0xff]  ;;  %v496_v13 = vld [vmem:[%s717_s0 + $0x20] sm:$0xff]  ;;  %v66_v16 = vld [vmem:[%s718_s2 + $0x58] sm:$0xff] }
   0x6   :  { %v64_v15 = vld [vmem:[%s718_s2 + $0x48] sm:$0xff]  ;;  %v495_v17 = vld [vmem:[%s717_s0 + $0x18] sm:$0xff]  ;;  %v67_v19 = vld [vmem:[%s718_s2 + $0x60] sm:$0xff] }
   0x7   :  { %v68_v18 = vld [vmem:[%s718_s2 + $0x68] sm:$0xff]  ;;  %v69_v20 = vld [vmem:[%s718_s2 + $0x70] sm:$0xff]  ;;  %v70_v23 = vld [vmem:[%s718_s2 + $0x78] sm:$0xff] }
   0x8   :  { %v494_v21 = vld [vmem:[%s717_s0 + $0x10] sm:$0xff]  ;;  %v493_v24 = vld [vmem:[%s717_s0 + $0x8] sm:$0xff]  ;;  %v492_v25 = vld [vmem:[%s717_s0] sm:$0xff] }
   0x9   :  { %v500_v26 = vld [vmem:[%s719_s1] sm:$0xff]  ;;  %v502_v27 = vld [vmem:[%s719_s1 + $0x10] sm:$0xff]  ;;  %v501_v30 = vld [vmem:[%s719_s1 + $0x8] sm:$0xff] }
   0xa   :  { %88 = vperm.xlu1 %536, %v58_v6   ;;  %v504_v28 = vld [vmem:[%s719_s1 + $0x20] sm:$0xff]  ;;  %v506_v29 = vld [vmem:[%s719_s1 + $0x30] sm:$0xff]  ;;  %v503_v31 = vld [vmem:[%s719_s1 + $0x18] sm:$0xff] }
   0xb   :  { %248 = vmatpush.bf16.xpose.msra.mxu0 %v498_v5  ;;  %511 = vmatpush.bf16.xpose.msra.mxu1 %v498_v5  ;;  %v505_v32 = vld [vmem:[%s719_s1 + $0x28] sm:$0xff]  ;;  %v507_v33 = vld [vmem:[%s719_s1 + $0x38] sm:$0xff] }
   0xc   :  { %512 = vmatpush.bf16.xpose.msra.mxu2 %v498_v5  ;;  %513 = vmatpush.bf16.xpose.msra.mxu3 %v498_v5 }
   0xd   :  { %78 = vperm.xlu0 %535, %v56_v7   ;;  %98 = vperm.xlu2 %537, %v599_v8  }
  0x12   :  { %108 = vperm.xlu1 %536, %v62_v10  }
  0x13   :  { %249 = vmatpush.bf16.xpose.msra.mxu0 %v497_v9  ;;  %514 = vmatpush.bf16.xpose.msra.mxu1 %v497_v9 }
  0x14   :  { %515 = vmatpush.bf16.xpose.msra.mxu2 %v497_v9  ;;  %516 = vmatpush.bf16.xpose.msra.mxu3 %v497_v9 }
  0x15   :  { %103 = vperm.xlu0 %535, %v61_v11   ;;  %113 = vperm.xlu2 %537, %v614_v12  }
  0x1a   :  { %123 = vperm.xlu1 %536, %v65_v14  }
  0x1b   :  { %250 = vmatpush.bf16.xpose.msra.mxu0 %v496_v13  ;;  %517 = vmatpush.bf16.xpose.msra.mxu1 %v496_v13 }
  0x1c   :  { %518 = vmatpush.bf16.xpose.msra.mxu2 %v496_v13  ;;  %519 = vmatpush.bf16.xpose.msra.mxu3 %v496_v13 }
  0x1d   :  { %118 = vperm.xlu0 %535, %v64_v15   ;;  %128 = vperm.xlu2 %537, %v66_v16  }
  0x22   :  { %138 = vperm.xlu1 %536, %v68_v18  }
  0x23   :  { %251 = vmatpush.bf16.xpose.msra.mxu0 %v495_v17  ;;  %520 = vmatpush.bf16.xpose.msra.mxu1 %v495_v17 }
  0x24   :  { %521 = vmatpush.bf16.xpose.msra.mxu2 %v495_v17  ;;  %522 = vmatpush.bf16.xpose.msra.mxu3 %v495_v17 }
  0x25   :  { %133 = vperm.xlu0 %535, %v67_v19   ;;  %143 = vperm.xlu2 %537, %v69_v20  }
  0x2a   :  { %538 = vset.pattern.permute.xlu1 %v542_v22 }
  0x2b   :  { %252 = vmatpush.bf16.xpose.msra.mxu0 %v494_v21  ;;  %523 = vmatpush.bf16.xpose.msra.mxu1 %v494_v21 }
  0x2c   :  { %524 = vmatpush.bf16.xpose.msra.mxu2 %v494_v21  ;;  %525 = vmatpush.bf16.xpose.msra.mxu3 %v494_v21 }
  0x2d   :  { %313 = vperm.xlu1 %538, %v55_v3   ;;  %148 = vperm.xlu0 %535, %v70_v23   ;;  %v543_v3 = vmov 0.0  }
  0x2e   :  { %539 = vset.pattern.permute.xlu2 %v542_v22  ;;  %22 = vst [vmem:[%s720_s4] sm:$0x1] %v543_v3 }
  0x2f   :  { %317 = vperm.xlu2 %539, %v56_v7  }
  0x33   :  { %253 = vmatpush.bf16.xpose.msra.mxu0 %v493_v24  ;;  %526 = vmatpush.bf16.xpose.msra.mxu1 %v493_v24 }
  0x34   :  { %527 = vmatpush.bf16.xpose.msra.mxu2 %v493_v24  ;;  %528 = vmatpush.bf16.xpose.msra.mxu3 %v493_v24 }
  0x35   :  { %325 = vperm.xlu1 %538, %v58_v6   ;;  %540 = vset.pattern.permute.xlu0 %v542_v22 }
  0x36   :  { %321 = vperm.xlu0 %540, %v575_v2  }
  0x37   :  { %329 = vperm.xlu2 %539, %v584_v4  }
  0x3b   :  { %254 = vmatpush.bf16.xpose.msra.mxu0 %v492_v25  ;;  %529 = vmatpush.bf16.xpose.msra.mxu1 %v492_v25 }
  0x3c   :  { %530 = vmatpush.bf16.xpose.msra.mxu2 %v492_v25  ;;  %531 = vmatpush.bf16.xpose.msra.mxu3 %v492_v25 }
  0x3d   :  { %333 = vperm.xlu1 %538, %v599_v8  }
  0x3e   :  { %341 = vperm.xlu0 %540, %v62_v10  }
  0x3f   :  { %337 = vperm.xlu2 %539, %v61_v11  }
  0x42   :  { %255 = vmatmul.bf16.vlgmr.msra.gmra.mxu0 %v500_v26  ;;  %265 = vmatmul.bf16.vlgmr.msra.gmra.mxu1 %v502_v27 }
  0x43   :  { %275 = vmatmul.bf16.vlgmr.msra.gmra.mxu2 %v504_v28  ;;  %285 = vmatmul.bf16.vlgmr.msra.gmra.mxu3 %v506_v29 }
  0x45   :  { %345 = vperm.xlu1 %538, %v614_v12  }
  0x46   :  { %353 = vperm.xlu0 %540, %v65_v14  }
  0x47   :  { %349 = vperm.xlu2 %539, %v64_v15  }
  0x4d   :  { %357 = vperm.xlu1 %538, %v66_v16  }
  0x4e   :  { %365 = vperm.xlu0 %540, %v68_v18  }
  0x4f   :  { %361 = vperm.xlu2 %539, %v67_v19  }
  0x52   :  { %260 = vmatmul.bf16.gmra.mxu0 %v501_v30  ;;  %270 = vmatmul.bf16.gmra.mxu1 %v503_v31 }
  0x53   :  { %280 = vmatmul.bf16.gmra.mxu2 %v505_v32  ;;  %290 = vmatmul.bf16.gmra.mxu3 %v507_v33 }
  0x55   :  { %369 = vperm.xlu1 %538, %v69_v20  }
  0x57   :  { %373 = vperm.xlu2 %539, %v70_v23  }
  0x5f   :  { %v94_v35 = vpop.permute.xlu2 %93 }
  0x67   :  { %v99_v38 = vpop.permute.xlu2 %98 }
  0x6f   :  { %v114_v41 = vpop.permute.xlu2 %113 }
  0x74   :  { %v84_v34 = vpop.permute.xlu1 %83 }
  0x77   :  { %v74_v36 = vpop.permute.xlu0 %73  ;;  %v683_v44 = vpop.permute.xlu2 %128 }
  0x7c   :  { %v89_v37 = vpop.permute.xlu1 %88 }
  0x7f   :  { %v79_v39 = vpop.permute.xlu0 %78  ;;  %v687_v47 = vpop.permute.xlu2 %143 }
  0x84   :  { %v109_v40 = vpop.permute.xlu1 %108 }
  0x87   :  { %v104_v42 = vpop.permute.xlu0 %103 }
  0x89   :  { %v318_v52 = vpop.permute.xlu2 %317 }
  0x8c   :  { %v681_v43 = vpop.permute.xlu1 %123 }
  0x8f   :  { %v119_v45 = vpop.permute.xlu0 %118 }
  0x91   :  { %v330_v58 = vpop.permute.xlu2 %329 }
  0x94   :  { %v685_v46 = vpop.permute.xlu1 %138 }
  0x97   :  { %v689_v48 = vpop.permute.xlu0 %133 }
  0x99   :  { %v338_v8 = vpop.permute.xlu2 %337 }
  0x9f   :  { %v314_v49 = vpop.permute.xlu1 %313  ;;  %v691_v53 = vpop.permute.xlu0 %148 }
  0xa1   :  { %v350_v33 = vpop.permute.xlu2 %349 }
  0xa7   :  { %v326_v57 = vpop.permute.xlu1 %325 }
  0xa8   :  { %v322_v60 = vpop.permute.xlu0 %321 }
  0xaf   :  { %v334_v5 = vpop.permute.xlu1 %333 }
  0xb0   :  { %v342_v18 = vpop.permute.xlu0 %341 }
  0xb7   :  { %v346_v28 = vpop.permute.xlu1 %345 }
  0xbf   :  { %v256_v50 = vpop.f32.mrf.mxu0  ;;  %v266_v51 = vpop.f32.mrf.mxu1 }
  0xc0   :  { %v257_v1 = vadd.f32 %v256_v50, %v74_v36  ;;  %v267_v10 = vadd.f32 %v266_v51, %v94_v35 }
  0xc2   :  { %v296_v6 = vmax.f32 %v257_v1, 0.0  ;;  %v300_v20 = vmax.f32 %v267_v10, 0.0  ;;  %v362_v1 = vpop.permute.xlu2 %361 }
  0xc4   :  { %v376_v14 = vmul.f32 %v314_v49, %v296_v6  ;;  %v380_v29 = vmul.f32 %v330_v58, %v300_v20 }
  0xc6   :  { %v276_v54 = vpop.f32.mrf.mxu2  ;;  %v286_v59 = vpop.f32.mrf.mxu3 }
  0xc7   :  { %v258_v55 = vpop.f32.mrf.mxu0  ;;  %v268_v56 = vpop.f32.mrf.mxu1  ;;  %v277_v30 = vadd.f32 %v276_v54, %v114_v41 }
  0xc8   :  { %v259_v61 = vadd.f32 %v258_v55, %v79_v39  ;;  %v269_v15 = vadd.f32 %v268_v56, %v99_v38 }
  0xc9   :  { %v304_v49 = vmax.f32 %v277_v30, 0.0 }
  0xca   :  { %v297_v4 = vmax.f32 %v259_v61, 0.0  ;;  %v301_v24 = vmax.f32 %v269_v15, 0.0 }
  0xcb   :  { %v384_v54 = vmul.f32 %v346_v28, %v304_v49 }
  0xcc   :  { %v377_v11 = vmul.f32 %v318_v52, %v297_v4  ;;  %v381_v35 = vmul.f32 %v334_v5, %v301_v24  ;;  %v354_v52 = vpop.permute.xlu0 %353 }
  0xce   :  { %v278_v62 = vpop.f32.mrf.mxu2  ;;  %v288_v9 = vpop.f32.mrf.mxu3  ;;  %v392_v21 = vadd.f32 %v377_v11, %v376_v14 }
  0xcf   :  { %v261_v63 = vpop.f32.mrf.mxu0  ;;  %v271_v0 = vpop.f32.mrf.mxu1  ;;  %v279_v36 = vadd.f32 %v278_v62, %v119_v45  ;;  %v289_v62 = vadd.f32 %v288_v9, %v685_v46 }
  0xd0   :  { %v262_v2 = vadd.f32 %v261_v63, %v84_v34  ;;  %v272_v22 = vadd.f32 %v271_v0, %v104_v42  ;;  %v358_v45 = vpop.permute.xlu1 %357 }
  0xd1   :  { %v305_v55 = vmax.f32 %v279_v36, 0.0  ;;  %v309_v6 = vmax.f32 %v289_v62, 0.0 }
  0xd2   :  { %v298_v7 = vmax.f32 %v262_v2, 0.0  ;;  %v302_v31 = vmax.f32 %v272_v22, 0.0 }
  0xd3   :  { %v385_v61 = vmul.f32 %v350_v33, %v305_v55 }
  0xd4   :  { %v378_v16 = vmul.f32 %v322_v60, %v298_v7  ;;  %v382_v50 = vmul.f32 %v338_v8, %v302_v31 }
  0xd6   :  { %v281_v12 = vpop.f32.mrf.mxu2  ;;  %v393_v25 = vadd.f32 %v392_v21, %v378_v16  ;;  %v291_v34 = vpop.f32.mrf.mxu3 }
  0xd7   :  { %v263_v13 = vpop.f32.mrf.mxu0  ;;  %v273_v19 = vpop.f32.mrf.mxu1  ;;  %v282_v42 = vadd.f32 %v281_v12, %v681_v43  ;;  %v292_v4 = vadd.f32 %v291_v34, %v687_v47 }
  0xd8   :  { %v264_v17 = vadd.f32 %v263_v13, %v89_v37  ;;  %v274_v27 = vadd.f32 %v273_v19, %v109_v40  ;;  %v370_v13 = vpop.permute.xlu1 %369  ;;  %v374_v16 = vpop.permute.xlu2 %373 }
  0xd9   :  { %v306_v58 = vmax.f32 %v282_v42, 0.0  ;;  %v310_v10 = vmax.f32 %v292_v4, 0.0 }
  0xda   :  { %v299_v23 = vmax.f32 %v264_v17, 0.0  ;;  %v303_v38 = vmax.f32 %v274_v27, 0.0 }
  0xdb   :  { %v386_v3 = vmul.f32 %v354_v52, %v306_v58  ;;  %v390_v14 = vmul.f32 %v370_v13, %v310_v10 }
  0xdc   :  { %v379_v26 = vmul.f32 %v326_v57, %v299_v23  ;;  %v383_v40 = vmul.f32 %v342_v18, %v303_v38  ;;  %v287_v57 = vadd.f32 %v286_v59, %v689_v48  ;;  %v366_v59 = vpop.permute.xlu0 %365 }
  0xdd   :  { %v389_v12 = vmul.f32 %v366_v59, %v309_v6 }
  0xde   :  { %v394_v32 = vadd.f32 %v393_v25, %v379_v26  ;;  %v283_v39 = vpop.f32.mrf.mxu2  ;;  %v293_v43 = vpop.f32.mrf.mxu3  ;;  %v308_v2 = vmax.f32 %v287_v57, 0.0  ;;  %v421_v26 = vstv %s721_s3 }
  0xdf   :  { %v284_v41 = vadd.f32 %v283_v39, %v683_v44  ;;  %v294_v48 = vadd.f32 %v293_v43, %v691_v53  ;;  %v413_v53 = vld [vmem:[%s720_s4] sm:$0x1] }
  0xe0   :  { %v395_v37 = vadd.f32 %v394_v32, %v380_v29  ;;  %v388_v8 = vmul.f32 %v362_v1, %v308_v2 }
  0xe1   :  { %v307_v0 = vmax.f32 %v284_v41, 0.0  ;;  %v311_v9 = vmax.f32 %v294_v48, 0.0 }
  0xe2   :  { %v396_v51 = vadd.f32 %v395_v37, %v381_v35 }
  0xe3   :  { %v387_v44 = vmul.f32 %v358_v45, %v307_v0  ;;  %v391_v17 = vmul.f32 %v374_v16, %v311_v9 }
  0xe4   :  { %v397_v56 = vadd.f32 %v396_v51, %v382_v50 }
  0xe6   :  { %v398_v60 = vadd.f32 %v397_v56, %v383_v40 }
  0xe8   :  { %v399_v63 = vadd.f32 %v398_v60, %v384_v54 }
  0xea   :  { %v400_v5 = vadd.f32 %v399_v63, %v385_v61 }
  0xec   :  { %v401_v7 = vadd.f32 %v400_v5, %v386_v3 }
  0xee   :  { %v402_v11 = vadd.f32 %v401_v7, %v387_v44 }
  0xf0   :  { %v403_v46 = vadd.f32 %v402_v11, %v388_v8 }
  0xf2   :  { %v404_v15 = vadd.f32 %v403_v46, %v389_v12 }
  0xf4   :  { %v405_v18 = vadd.f32 %v404_v15, %v390_v14 }
  0xf6   :  { %v406_v47 = vadd.f32 %v405_v18, %v391_v17 }
  0xf8   :  { %v407_v19 = vrot.slane %v406_v47, 4 }
  0xfa   :  { %v408_v20 = vadd.f32 %v407_v19, %v406_v47 }
  0xfc   :  { %v409_v21 = vrot.slane %v408_v20, 2 }
  0xfe   :  { %v410_v22 = vadd.f32 %v409_v21, %v408_v20 }
 0x100   :  { %v411_v23 = vrot.slane %v410_v22, 1 }
 0x102   :  { %v412_v24 = vadd.f32 %v411_v23, %v410_v22 }
 0x104   :  { %v414_v25 = vadd.f32 %v413_v53, %v412_v24 }
 0x106   :  { %415 = vst [vmem:[%s720_s4] sm:$0x1] %v414_v25 }
 0x10d   :  { %v419_v27 = vld [vmem:[%s720_s4] sm:$0x1] }
 0x10e   :  { %v422_v28 = vadd.f32 %v421_v26, %v419_v27 }
 0x110   :  { %423 = vst [vmem:[%s720_s4] sm:$0x1] %v422_v28 }

</bundles_post_ra>
